<compile_context>
chip_gen: v7x
topology: tpu7x:2x2x1
jax: 0.10.0
libtpu: 0.0.40
codegen_flags: <defaults>
</compile_context>

<pallas_src>
import math
from functools import partial

import jax
import jax.numpy as jnp
from jax import lax
from jax.experimental import pallas as pl
from jax.experimental.pallas import tpu as pltpu

_EPS = 1e-15


def _round_up(x: int, m: int) -> int:
    return (x + m - 1) // m * m


def _vmem_capacity_bytes() -> int:
    try:
        return int(pltpu.get_tpu_info().vmem_capacity_bytes)
    except Exception:
        return 64 * 1024 * 1024  # conservative (v7x per-core VMEM)


def _expmap0_host(v, c: float):
    """expmap0 of a single vector in plain JAX (wrapper-side, runs once per call).

    Returns (expmap0(v) as f32, c*||expmap0(v)||^2 as f32 scalar)."""
    sqrt_c = math.sqrt(c)
    v = v.astype(jnp.float32)
    sq = jnp.maximum(jnp.sum(v * v), _EPS * _EPS)
    inv = lax.rsqrt(sq)
    t = jnp.tanh(sqrt_c * (sq * inv))               # tanh(sqrt(c)*||v||)
    hb = v * (t * (1.0 / sqrt_c) * inv)
    return hb, t * t                                 # c*||hb||^2 = tanh^2 closed form


def _poincare_kernel(x_ref, wt_ref, hb_ref, cy2_ref, o_ref, *, c: float, xy_col: int):
    sqrt_c = math.sqrt(c)

    # --- mobius matvec Euclidean part on the MXU (pre-transposed W, NN contraction) ---
    mx = lax.dot_general(
        x_ref[...], wt_ref[...],
        dimension_numbers=(((1,), (0,)), ((), ())),
        preferred_element_type=jnp.float32,
    )                                                          # (TM, Dp) f32

    hb = hb_ref[...].astype(jnp.float32)                       # (1, Dp) expmap0(bias)
    c_y2 = cy2_ref[0, 0]                                       # scalar: c*||hb||^2 (SMEM)

    if xy_col >= 0:
        # Column `xy_col` of mx holds x @ (W^T hb) == <mx, hb> (packed by the wrapper
        # into a spare zero-padded column): only one XLU reduction remains.
        lane = lax.broadcasted_iota(jnp.int32, mx.shape, 1)
        mxm = jnp.where(lane == xy_col, 0.0, mx)
        sq_mx = jnp.sum(mxm * mxm, axis=-1, keepdims=True)     # (TM,1)
        xy_raw = mx[:, xy_col:xy_col + 1]                      # (TM,1) = <mx, hb>
    else:
        sq_mx = jnp.sum(mx * mx, axis=-1, keepdims=True)
        xy_raw = jnp.sum(mx * hb, axis=-1, keepdims=True)

    # --- expmap0(mx): only the per-row scalars, h = s*mx is never materialized ---
    sq_mx = jnp.maximum(sq_mx, _EPS * _EPS)
    inv_norm = lax.rsqrt(sq_mx)                                # EUP
    norm = sq_mx * inv_norm                                    # == sqrt(sq_mx), no sqrt op
    t = jnp.tanh(sqrt_c * norm)                                # EUP
    s = (t * (1.0 / sqrt_c)) * inv_norm                        # h = s * mx
    c_x2 = t * t                                               # c*||h||^2 closed form

    # --- mobius_add(h, hb) folded into two narrow (TM,1) column coefficients ---
    xy = s * xy_raw                                            # <h, hb>
    two_c_xy = (2.0 * c) * xy
    den = 1.0 + two_c_xy + c_x2 * c_y2                         # 1 + 2c<h,hb> + c^2 x2 y2
    inv_den = pl.reciprocal(jnp.maximum(den, _EPS), approx=True)   # EUP
    col_a = (1.0 + two_c_xy + c_y2) * s * inv_den              # multiplies mx
    col_b = (1.0 - c_x2) * inv_den                             # multiplies hb

    o_ref[...] = (col_a * mx + col_b * hb).astype(o_ref.dtype)


def poincare_ball_layer(x, weight, bias, c: float = 1.0, *,
                        block_rows: int = 1024, compute_dtype=None):
    """x: (B, in_features); weight: (out_features, in_features); bias: (out_features,) or None.

    Pass compute_dtype=jnp.bfloat16 to feed the MXU in bf16 (f32 accumulation kept);
    needs a precision sign-off vs the f32 default.
    """
    B, d_in = x.shape
    d_out = weight.shape[0]
    out_dtype = x.dtype
    mm_dtype = jnp.dtype(compute_dtype) if compute_dtype is not None else jnp.dtype(x.dtype)

    if bias is None:
        bias = jnp.zeros((d_out,), jnp.float32)

    # --- one-time wrapper prep: bias expmap, weight transpose + lane padding ---
    hb, c_y2 = _expmap0_host(bias, c)                              # (d_out,) f32, scalar
    c_y2 = jnp.reshape(c_y2, (1, 1)).astype(jnp.float32)

    d_out_p = max(_round_up(d_out, 128), 128)                      # lane-dense output
    xy_col = d_out if d_out_p > d_out else -1                      # spare padded column?

    w_f32_t = weight.astype(jnp.float32).T                         # (d_in, d_out)
    if d_out_p != d_out:
        w_t = jnp.zeros((d_in, d_out_p), jnp.float32).at[:, :d_out].set(w_f32_t)
    else:
        w_t = w_f32_t
    if xy_col >= 0:
        # Fold <mx, hb> into the MXU: mx[:, xy_col] = x @ (W^T hb).
        w_t = w_t.at[:, xy_col].set(w_f32_t @ hb)
    w_t = w_t.astype(mm_dtype)

    hb_p = jnp.zeros((1, d_out_p), jnp.float32).at[0, :d_out].set(hb)

    # --- batch tiling: pad only to the sublane granule; ragged last tile is masked ---
    granule = 8 * max(1, 4 // jnp.dtype(mm_dtype).itemsize)        # 8 (f32) / 16 (bf16)
    b_p = _round_up(max(B, 1), granule)
    xm = x.astype(mm_dtype)
    if b_p != B:
        xm = jnp.pad(xm, ((0, b_p - B), (0, 0)))

    vmem_cap = _vmem_capacity_bytes()
    itemsize_mm = jnp.dtype(mm_dtype).itemsize
    itemsize_out = jnp.dtype(out_dtype).itemsize

    tm = min(_round_up(block_rows, granule), b_p)
    # Keep the per-block working set (x tile, out tile, f32 temporaries) well under VMEM.
    row_bytes = itemsize_mm * d_in + (itemsize_out + 4 * 4) * d_out_p
    tm_cap = max(granule, (vmem_cap // 4) // max(row_bytes, 1) // granule * granule)
    tm = max(granule, min(tm, tm_cap))
    grid = (pl.cdiv(b_p, tm),)

    # Generation-aware scoped-VMEM request (v5e/v6e: 128 MiB, v7x: 64 MiB).
    est = (2 * itemsize_mm * (tm * d_in + d_in * d_out_p)          # x (dbl) + W (worst case dbl)
           + 2 * itemsize_out * tm * d_out_p                       # out (dbl)
           + 4 * 4 * tm * d_out_p                                  # f32 temporaries headroom
           + 2 * 4 * d_out_p)                                      # hb
    vmem_limit = int(min(max(2 * est, 32 * 1024 * 1024), (vmem_cap * 85) // 100))

    kernel = partial(_poincare_kernel, c=float(c), xy_col=xy_col)
    out_shape = jax.ShapeDtypeStruct((b_p, d_out_p), out_dtype)

    def run(resident_mode):
        resident_kwargs = {} if resident_mode is None else {"pipeline_mode": resident_mode}
        in_specs = [
            pl.BlockSpec((tm, d_in), lambda i: (i, 0)),                        # x rows (pipelined)
            pl.BlockSpec((d_in, d_out_p), lambda i: (0, 0), **resident_kwargs),  # W^T (resident)
            pl.BlockSpec((1, d_out_p), lambda i: (0, 0), **resident_kwargs),     # expmap0(bias)
            pl.BlockSpec(memory_space=pltpu.MemorySpace.SMEM),                   # c*y2 scalar
        ]
        return pl.pallas_call(
            kernel,
            out_shape=out_shape,
            grid_spec=pltpu.PrefetchScalarGridSpec(
                num_scalar_prefetch=0,
                grid=grid,
                in_specs=in_specs,
                out_specs=pl.BlockSpec((tm, d_out_p), lambda i: (i, 0)),
            ),
            compiler_params=pltpu.CompilerParams(
                dimension_semantics=("parallel",),
                vmem_limit_bytes=vmem_limit,
            ),
        )(xm, w_t, hb_p, c_y2)

    try:
        # Constant index_map -> single-buffer the resident weight/bias (halves their VMEM).
        out = run(pl.Buffered(1)) if hasattr(pl, "Buffered") else run(None)
    except Exception:
        out = run(None)

    if b_p != B or d_out_p != d_out:
        out = out[:B, :d_out]
    return out


def _reference(x, weight, bias, c: float = 1.0):
    sqrt_c = math.sqrt(c)
    mx = x @ weight.T
    n = jnp.maximum(jnp.linalg.norm(mx, axis=-1, keepdims=True), _EPS)
    h = jnp.tanh(sqrt_c * n) * mx / (sqrt_c * n)
    bn = jnp.maximum(jnp.linalg.norm(bias), _EPS)
    hb = (jnp.tanh(sqrt_c * bn) * bias / (sqrt_c * bn))[None, :]
    x2 = jnp.sum(h * h, -1, keepdims=True)
    y2 = jnp.sum(hb * hb, -1, keepdims=True)
    xy = jnp.sum(h * hb, -1, keepdims=True)
    num = (1 + 2 * c * xy + c * y2) * h + (1 - c * x2) * hb
    den = jnp.maximum(1 + 2 * c * xy + c * c * x2 * y2, _EPS)
    return num / den


def _make_inputs(key, batch, d_in, d_out):
    k_x, k_w, k_b = jax.random.split(key, 3)
    bound_w = math.sqrt(6.0 / (d_in + d_out))            # xavier_uniform
    weight = jax.random.uniform(k_w, (d_out, d_in), jnp.float32,
                                minval=-bound_w, maxval=bound_w)
    bound_b = 1.0 / math.sqrt(d_in)                      # uniform(-1/sqrt(fan_in), +)
    bias = jax.random.uniform(k_b, (d_out,), jnp.float32,
                              minval=-bound_b, maxval=bound_b)
    x = 0.1 * jax.random.normal(k_x, (batch, d_in), jnp.float32)  # well inside the ball
    return x, weight, bias


if __name__ == "__main__":
    root = jax.random.PRNGKey(0)
    cases = [
        # (batch, d_in, d_out, c, block_rows)
        (8, 32, 32, 1.0, 1024),    # spare padded column -> MXU-computed <mx,hb>
        (8, 32, 128, 1.0, 1024),   # d_out % 128 == 0  -> in-kernel <mx,hb> reduce
        (20, 32, 32, 1.0, 16),     # ragged last grid tile (b_p=24, tm=16, grid=2)
    ]
    for i, (batch, d_in, d_out, c, block_rows) in enumerate(cases):
        x, weight, bias = _make_inputs(jax.random.fold_in(root, i), batch, d_in, d_out)
        out = jax.block_until_ready(
            poincare_ball_layer(x, weight, bias, c, block_rows=block_rows))
        ref = _reference(x, weight, bias, c)
        assert out.shape == (batch, d_out), (out.shape, (batch, d_out))
        err = float(jnp.max(jnp.abs(out - ref)))
        assert jnp.allclose(out, ref, atol=2e-3, rtol=2e-3), f"case {i}: max abs err {err}"
    print("KERNEL_OK")
</pallas_src>

<mosaic_0001>
module attributes {stable_mosaic.version = 11 : i64} {
  func.func @_poincare_kernel(%arg0: i32, %arg1: memref<8x32xf32, #tpu.memory_space<vmem>>, %arg2: memref<32x128xf32, #tpu.memory_space<vmem>>, %arg3: memref<1x128xf32, #tpu.memory_space<vmem>>, %arg4: memref<1x1xf32, #tpu.memory_space<smem>>, %arg5: memref<8x128xf32, #tpu.memory_space<vmem>>) attributes {dimension_semantics = [#tpu.dimension_semantics<parallel>], iteration_bounds = array<i64: 1>, scalar_prefetch = 0 : i64, scratch_operands = 0 : i64, tpu.core_type = #tpu.core_type<tc>, window_params = [{transform_indices = @transform_0, window_bounds = array<i64: 8, 32>}, {pipeline_mode = #tpu.pipeline_mode<synchronous>, transform_indices = @transform_1, window_bounds = array<i64: 32, 128>}, {pipeline_mode = #tpu.pipeline_mode<synchronous>, transform_indices = @transform_2, window_bounds = array<i64: 1, 128>}, {transform_indices = @transform_3, window_bounds = array<i64: 1, 1>}, {transform_indices = @transform_4, window_bounds = array<i64: 8, 128>}]} {
    %c0 = arith.constant 0 : index
    %c0_0 = arith.constant 0 : index
    %0 = vector.load %arg1[%c0, %c0_0] : memref<8x32xf32, #tpu.memory_space<vmem>>, vector<8x32xf32>
    %c0_1 = arith.constant 0 : index
    %c0_2 = arith.constant 0 : index
    %1 = vector.load %arg2[%c0_1, %c0_2] : memref<32x128xf32, #tpu.memory_space<vmem>>, vector<32x128xf32>
    %cst = arith.constant dense<0.000000e+00> : vector<8x128xf32>
    %2 = tpu.matmul %0, %1, %cst {dimension_numbers = #tpu.dot_dimension_numbers<[1], [0], [0], [1], [0, 0, 1, 1], [], []>} : vector<8x32xf32>, vector<32x128xf32>, vector<8x128xf32> -> vector<8x128xf32>
    %c0_3 = arith.constant 0 : index
    %c0_4 = arith.constant 0 : index
    %3 = vector.load %arg3[%c0_3, %c0_4] : memref<1x128xf32, #tpu.memory_space<vmem>>, vector<1x128xf32>
    %c0_5 = arith.constant 0 : index
    %c0_6 = arith.constant 0 : index
    %4 = memref.load %arg4[%c0_5, %c0_6] : memref<1x1xf32, #tpu.memory_space<smem>>
    %5 = tpu.iota {dimensions = array<i32: 1>} : vector<8x128xi32>
    %c32_i32 = arith.constant 32 : i32
    %6 = vector.broadcast %c32_i32 : i32 to vector<8x128xi32>
    %7 = arith.cmpi eq, %5, %6 : vector<8x128xi32>
    %cst_7 = arith.constant 0.000000e+00 : f32
    %8 = vector.broadcast %cst_7 : f32 to vector<8x128xf32>
    %9 = arith.select %7, %8, %2 : vector<8x128xi1>, vector<8x128xf32>
    %10 = arith.mulf %9, %9 : vector<8x128xf32>
    %cst_8 = arith.constant dense<0.000000e+00> : vector<8xf32>
    %11 = vector.multi_reduction <add>, %10, %cst_8 [1] : vector<8x128xf32> to vector<8xf32>
    %12 = vector.shape_cast %11 : vector<8xf32> to vector<8x1xf32>
    %13 = vector.extract_strided_slice %2 {offsets = [0, 32], sizes = [8, 1], strides = [1, 1]} : vector<8x128xf32> to vector<8x1xf32>
    %cst_9 = arith.constant 1.000000e-30 : f32
    %14 = vector.broadcast %cst_9 : f32 to vector<8x1xf32>
    %15 = arith.maximumf %12, %14 : vector<8x1xf32>
    %16 = math.rsqrt %15 : vector<8x1xf32>
    %17 = arith.mulf %15, %16 : vector<8x1xf32>
    %cst_10 = arith.constant 1.000000e+00 : f32
    %18 = vector.broadcast %cst_10 : f32 to vector<8x1xf32>
    %19 = arith.mulf %18, %17 : vector<8x1xf32>
    %20 = math.tanh %19 : vector<8x1xf32>
    %cst_11 = arith.constant 1.000000e+00 : f32
    %21 = vector.broadcast %cst_11 : f32 to vector<8x1xf32>
    %22 = arith.mulf %20, %21 : vector<8x1xf32>
    %23 = arith.mulf %22, %16 : vector<8x1xf32>
    %24 = arith.mulf %20, %20 : vector<8x1xf32>
    %25 = arith.mulf %23, %13 : vector<8x1xf32>
    %cst_12 = arith.constant 2.000000e+00 : f32
    %26 = vector.broadcast %cst_12 : f32 to vector<8x1xf32>
    %27 = arith.mulf %26, %25 : vector<8x1xf32>
    %cst_13 = arith.constant 1.000000e+00 : f32
    %28 = vector.broadcast %cst_13 : f32 to vector<8x1xf32>
    %29 = arith.addf %28, %27 : vector<8x1xf32>
    %30 = vector.broadcast %4 : f32 to vector<8x1xf32>
    %31 = arith.mulf %24, %30 : vector<8x1xf32>
    %32 = arith.addf %29, %31 : vector<8x1xf32>
    %cst_14 = arith.constant 1.000000e-15 : f32
    %33 = vector.broadcast %cst_14 : f32 to vector<8x1xf32>
    %34 = arith.maximumf %32, %33 : vector<8x1xf32>
    %35 = tpu.reciprocal %34 {approx = true} : vector<8x1xf32> -> vector<8x1xf32>
    %cst_15 = arith.constant 1.000000e+00 : f32
    %36 = vector.broadcast %cst_15 : f32 to vector<8x1xf32>
    %37 = arith.addf %36, %27 : vector<8x1xf32>
    %38 = vector.broadcast %4 : f32 to vector<8x1xf32>
    %39 = arith.addf %37, %38 : vector<8x1xf32>
    %40 = arith.mulf %39, %23 : vector<8x1xf32>
    %41 = arith.mulf %40, %35 : vector<8x1xf32>
    %cst_16 = arith.constant 1.000000e+00 : f32
    %42 = vector.broadcast %cst_16 : f32 to vector<8x1xf32>
    %43 = arith.subf %42, %24 : vector<8x1xf32>
    %44 = arith.mulf %43, %35 : vector<8x1xf32>
    %45 = vector.broadcast %41 : vector<8x1xf32> to vector<8x128xf32>
    %46 = arith.mulf %45, %2 : vector<8x128xf32>
    %47 = vector.broadcast %44 : vector<8x1xf32> to vector<8x128xf32>
    %48 = vector.broadcast %3 : vector<1x128xf32> to vector<8x128xf32>
    %49 = arith.mulf %47, %48 : vector<8x128xf32>
    %50 = arith.addf %46, %49 : vector<8x128xf32>
    %c0_17 = arith.constant 0 : index
    %c0_18 = arith.constant 0 : index
    %51 = vector.load %arg5[%c0_17, %c0_18] : memref<8x128xf32, #tpu.memory_space<vmem>>, vector<8x128xf32>
    tpu.vector_store %arg5[%c0_17, %c0_18], %50 {strides = array<i32>} : memref<8x128xf32, #tpu.memory_space<vmem>>, vector<8x128xf32>,
    return
  }
  func.func @transform_0(%arg0: i32) -> (i32, i32) {
    %c0_i32 = arith.constant 0 : i32
    %c0_i32_0 = arith.constant 0 : i32
    return %arg0, %c0_i32 : i32, i32
  }
  func.func @transform_1(%arg0: i32) -> (i32, i32) {
    %c0_i32 = arith.constant 0 : i32
    %c0_i32_0 = arith.constant 0 : i32
    %c0_i32_1 = arith.constant 0 : i32
    return %c0_i32, %c0_i32_0 : i32, i32
  }
  func.func @transform_2(%arg0: i32) -> (i32, i32) {
    %c0_i32 = arith.constant 0 : i32
    %c0_i32_0 = arith.constant 0 : i32
    %c0_i32_1 = arith.constant 0 : i32
    return %c0_i32, %c0_i32_0 : i32, i32
  }
  func.func @transform_3(%arg0: i32) -> (i32, i32) {
    %c0_i32 = arith.constant 0 : i32
    %c0_i32_0 = arith.constant 0 : i32
    %c0_i32_1 = arith.constant 0 : i32
    return %c0_i32, %c0_i32_0 : i32, i32
  }
  func.func @transform_4(%arg0: i32) -> (i32, i32) {
    %c0_i32 = arith.constant 0 : i32
    %c0_i32_0 = arith.constant 0 : i32
    return %arg0, %c0_i32 : i32, i32
  }
}

module attributes {stable_mosaic.version = 11 : i64} {
  func.func @_poincare_kernel(%arg0: i32, %arg1: memref<8x32xf32, #tpu.memory_space<vmem>>, %arg2: memref<32x128xf32, #tpu.memory_space<vmem>>, %arg3: memref<1x128xf32, #tpu.memory_space<vmem>>, %arg4: memref<1x1xf32, #tpu.memory_space<smem>>, %arg5: memref<8x128xf32, #tpu.memory_space<vmem>>) attributes {dimension_semantics = [#tpu.dimension_semantics<parallel>], iteration_bounds = array<i64: 1>, scalar_prefetch = 0 : i64, scratch_operands = 0 : i64, tpu.core_type = #tpu.core_type<tc>, window_params = [{transform_indices = @transform_0, window_bounds = array<i64: 8, 32>}, {pipeline_mode = #tpu.pipeline_mode<synchronous>, transform_indices = @transform_1, window_bounds = array<i64: 32, 128>}, {pipeline_mode = #tpu.pipeline_mode<synchronous>, transform_indices = @transform_2, window_bounds = array<i64: 1, 128>}, {transform_indices = @transform_3, window_bounds = array<i64: 1, 1>}, {transform_indices = @transform_4, window_bounds = array<i64: 8, 128>}]} {
    %c0 = arith.constant 0 : index
    %c0_0 = arith.constant 0 : index
    %0 = vector.load %arg1[%c0, %c0_0] : memref<8x32xf32, #tpu.memory_space<vmem>>, vector<8x32xf32>
    %c0_1 = arith.constant 0 : index
    %c0_2 = arith.constant 0 : index
    %1 = vector.load %arg2[%c0_1, %c0_2] : memref<32x128xf32, #tpu.memory_space<vmem>>, vector<32x128xf32>
    %cst = arith.constant dense<0.000000e+00> : vector<8x128xf32>
    %2 = tpu.matmul %0, %1, %cst {dimension_numbers = #tpu.dot_dimension_numbers<[1], [0], [0], [1], [0, 0, 1, 1], [], []>} : vector<8x32xf32>, vector<32x128xf32>, vector<8x128xf32> -> vector<8x128xf32>
    %c0_3 = arith.constant 0 : index
    %c0_4 = arith.constant 0 : index
    %3 = vector.load %arg3[%c0_3, %c0_4] : memref<1x128xf32, #tpu.memory_space<vmem>>, vector<1x128xf32>
    %c0_5 = arith.constant 0 : index
    %c0_6 = arith.constant 0 : index
    %4 = memref.load %arg4[%c0_5, %c0_6] : memref<1x1xf32, #tpu.memory_space<smem>>
    %5 = tpu.iota {dimensions = array<i32: 1>} : vector<8x128xi32>
    %c32_i32 = arith.constant 32 : i32
    %6 = vector.broadcast %c32_i32 : i32 to vector<8x128xi32>
    %7 = arith.cmpi eq, %5, %6 : vector<8x128xi32>
    %cst_7 = arith.constant 0.000000e+00 : f32
    %8 = vector.broadcast %cst_7 : f32 to vector<8x128xf32>
    %9 = arith.select %7, %8, %2 : vector<8x128xi1>, vector<8x128xf32>
    %10 = arith.mulf %9, %9 : vector<8x128xf32>
    %cst_8 = arith.constant dense<0.000000e+00> : vector<8xf32>
    %11 = vector.multi_reduction <add>, %10, %cst_8 [1] : vector<8x128xf32> to vector<8xf32>
    %12 = vector.shape_cast %11 : vector<8xf32> to vector<8x1xf32>
    %13 = vector.extract_strided_slice %2 {offsets = [0, 32], sizes = [8, 1], strides = [1, 1]} : vector<8x128xf32> to vector<8x1xf32>
    %cst_9 = arith.constant 1.000000e-30 : f32
    %14 = vector.broadcast %cst_9 : f32 to vector<8x1xf32>
    %15 = arith.maximumf %12, %14 : vector<8x1xf32>
    %16 = math.rsqrt %15 : vector<8x1xf32>
    %17 = arith.mulf %15, %16 : vector<8x1xf32>
    %cst_10 = arith.constant 1.000000e+00 : f32
    %18 = vector.broadcast %cst_10 : f32 to vector<8x1xf32>
    %19 = arith.mulf %18, %17 : vector<8x1xf32>
    %20 = math.tanh %19 : vector<8x1xf32>
    %cst_11 = arith.constant 1.000000e+00 : f32
    %21 = vector.broadcast %cst_11 : f32 to vector<8x1xf32>
    %22 = arith.mulf %20, %21 : vector<8x1xf32>
    %23 = arith.mulf %22, %16 : vector<8x1xf32>
    %24 = arith.mulf %20, %20 : vector<8x1xf32>
    %25 = arith.mulf %23, %13 : vector<8x1xf32>
    %cst_12 = arith.constant 2.000000e+00 : f32
    %26 = vector.broadcast %cst_12 : f32 to vector<8x1xf32>
    %27 = arith.mulf %26, %25 : vector<8x1xf32>
    %cst_13 = arith.constant 1.000000e+00 : f32
    %28 = vector.broadcast %cst_13 : f32 to vector<8x1xf32>
    %29 = arith.addf %28, %27 : vector<8x1xf32>
    %30 = vector.broadcast %4 : f32 to vector<8x1xf32>
    %31 = arith.mulf %24, %30 : vector<8x1xf32>
    %32 = arith.addf %29, %31 : vector<8x1xf32>
    %cst_14 = arith.constant 1.000000e-15 : f32
    %33 = vector.broadcast %cst_14 : f32 to vector<8x1xf32>
    %34 = arith.maximumf %32, %33 : vector<8x1xf32>
    %35 = tpu.reciprocal %34 {approx = true} : vector<8x1xf32> -> vector<8x1xf32>
    %cst_15 = arith.constant 1.000000e+00 : f32
    %36 = vector.broadcast %cst_15 : f32 to vector<8x1xf32>
    %37 = arith.addf %36, %27 : vector<8x1xf32>
    %38 = vector.broadcast %4 : f32 to vector<8x1xf32>
    %39 = arith.addf %37, %38 : vector<8x1xf32>
    %40 = arith.mulf %39, %23 : vector<8x1xf32>
    %41 = arith.mulf %40, %35 : vector<8x1xf32>
    %cst_16 = arith.constant 1.000000e+00 : f32
    %42 = vector.broadcast %cst_16 : f32 to vector<8x1xf32>
    %43 = arith.subf %42, %24 : vector<8x1xf32>
    %44 = arith.mulf %43, %35 : vector<8x1xf32>
    %45 = vector.broadcast %41 : vector<8x1xf32> to vector<8x128xf32>
    %46 = arith.mulf %45, %2 : vector<8x128xf32>
    %47 = vector.broadcast %44 : vector<8x1xf32> to vector<8x128xf32>
    %48 = vector.broadcast %3 : vector<1x128xf32> to vector<8x128xf32>
    %49 = arith.mulf %47, %48 : vector<8x128xf32>
    %50 = arith.addf %46, %49 : vector<8x128xf32>
    %c0_17 = arith.constant 0 : index
    %c0_18 = arith.constant 0 : index
    %51 = vector.load %arg5[%c0_17, %c0_18] : memref<8x128xf32, #tpu.memory_space<vmem>>, vector<8x128xf32>
    tpu.vector_store %arg5[%c0_17, %c0_18], %50 {strides = array<i32>} : memref<8x128xf32, #tpu.memory_space<vmem>>, vector<8x128xf32>,
    return
  }
  func.func @transform_0(%arg0: i32) -> (i32, i32) {
    %c0_i32 = arith.constant 0 : i32
    %c0_i32_0 = arith.constant 0 : i32
    return %arg0, %c0_i32 : i32, i32
  }
  func.func @transform_1(%arg0: i32) -> (i32, i32) {
    %c0_i32 = arith.constant 0 : i32
    %c0_i32_0 = arith.constant 0 : i32
    %c0_i32_1 = arith.constant 0 : i32
    return %c0_i32, %c0_i32_0 : i32, i32
  }
  func.func @transform_2(%arg0: i32) -> (i32, i32) {
    %c0_i32 = arith.constant 0 : i32
    %c0_i32_0 = arith.constant 0 : i32
    %c0_i32_1 = arith.constant 0 : i32
    return %c0_i32, %c0_i32_0 : i32, i32
  }
  func.func @transform_3(%arg0: i32) -> (i32, i32) {
    %c0_i32 = arith.constant 0 : i32
    %c0_i32_0 = arith.constant 0 : i32
    %c0_i32_1 = arith.constant 0 : i32
    return %c0_i32, %c0_i32_0 : i32, i32
  }
  func.func @transform_4(%arg0: i32) -> (i32, i32) {
    %c0_i32 = arith.constant 0 : i32
    %c0_i32_0 = arith.constant 0 : i32
    return %arg0, %c0_i32 : i32, i32
  }
}

</mosaic_0001>

<bundles_post_ra>
// kernel: tpu_custom_call.1
= control target key start
LH: loop header
LB: loop body
LE: loop exit
PB: predicated region body
PF: predicated region fallthrough
CT: control target
= control target key end

     0   :  { %10 = vsyncpa [#allocation4], 0  ;;  %s384_s0 = inlined_call_operand.hbm [shape: f32[8,32], index: 0, kind: input, shape index: {}]   ;;  %s385_s1 = inlined_call_operand.hbm [shape: f32[32,128], index: 1, kind: input, shape index: {}]   ;;  %s386_s2 = inlined_call_operand.vmem [shape: f32[1,128], index: 2, kind: input, shape index: {}]   ;;  %s387_s3 = inlined_call_operand.<no memory space> [shape: f32[1,1], index: 3, kind: input, shape index: {}]   ;;  %s388_s4 = inlined_call_operand.hbm [shape: f32[8,128], index: 4, kind: output, shape index: {}]  }
   0x1   :  { %11 = vsyncpa [#allocation7], 0 }
   0x2   :  { %12 = vsyncpa [#allocation5], 0  ;;  %s301_s15 = smov [#allocation3]   ;;  %s302_s17 = smov [#allocation6]  }
   0x3   :  { %s19_s16 = sshll.u32 %s301_s15, 4  ;;  %s28_s18 = sshll.u32 %s302_s17, 4  ;;  %s20_s16 = int_to_ptr.vmem [resolvable:$true] %s19_s16  ;;  %s335_s18 = int_to_ptr.vmem [resolvable:$true] %s28_s18 }
   0x4   :  { %s229_s21 = scalar_lea.hbm %s384_s0, 128 }
   0x5   :  { %p230_p0 = scmp.ne.s32.totalorder %s384_s0, %s229_s21  ;;  %p233_p1 = scmp.lt.u32.totalorder %s229_s21, %s384_s0 }
   0x7   :  { %p235_p2 = pnand %p233_p1, %p230_p0 }
   0x9   :  { %238 = shalt.err (!%p235_p2)
}
   0xa   :  { %s239_s26 = scalar_lea.vmem %s20_s16, 128  ;;  %p244_p4 = scmp.lt.s32.totalorder %s20_s16, %s20_s16 }
   0xb   :  { %p240_p3 = scmp.ne.s32.totalorder %s20_s16, %s239_s26  ;;  %p245_p5 = scmp.lt.s32.totalorder %s239_s26, %s239_s26 }
   0xd   :  { %p246_p6 = por %p245_p5, %p244_p4 }
   0xf   :  { %p247_p7 = pnand %p246_p6, %p240_p3 }
  0x11   :  { %250 = shalt.err (!%p247_p7)
}
  0x12   :  { %22 = dma.hbm_to_vmem [thread:$0]  %s384_s0, 128, %s20_s16, [#allocation4]  }
  0x13   :  { %s251_s5 = scalar_lea.hbm %s385_s1, 512 }
  0x14   :  { %p252_p8 = scmp.ne.s32.totalorder %s385_s1, %s251_s5  ;;  %p255_p9 = scmp.lt.u32.totalorder %s251_s5, %s385_s1 }
  0x16   :  { %p257_p10 = pnand %p255_p9, %p252_p8 }
  0x18   :  { %260 = shalt.err (!%p257_p10)
}
  0x19   :  { %s261_s10 = scalar_lea.vmem %s335_s18, 512  ;;  %p266_p12 = scmp.lt.s32.totalorder %s335_s18, %s335_s18 }
  0x1a   :  { %p262_p11 = scmp.ne.s32.totalorder %s335_s18, %s261_s10  ;;  %p267_p13 = scmp.lt.s32.totalorder %s261_s10, %s261_s10 }
  0x1c   :  { %p268_p0 = por %p267_p13, %p266_p12 }
  0x1e   :  { %p269_p1 = pnand %p268_p0, %p262_p11 }
  0x20   :  { %272 = shalt.err (!%p269_p1)
}
  0x21   :  { %s303_s0 = smov 128   ;;  %s304_s11 = smov 8  }
  0x22   :  { %34 = dma.hbm_to_vmem [thread:$0]  %s385_s1, 512, %s335_s18, [#allocation7], %s303_s0, %s303_s0, %s304_s11  }
  0x23   :  { %295 = dma.done.wait [#allocation4], 128  }
  0x24   :  { %296 = vsyncadd [#allocation4], 4294967168 }
  0x25   :  { %297 = dma.done.wait [#allocation7], 512  }
  0x26   :  { %298 = vsyncadd [#allocation7], 4294966784  ;;  %v305_v0 = vmov 0.0|0.0   ;;  %vm306_vm0 = vmmov 0   ;;  %v307_v1 = vmov 0.0   ;;  %v46_v2 = vld [vmem:[#allocation6] sm:$0xff]  ;;  %v126_v9 = vlaneseq }
  0x27   :  { %206 = vmatprep.subr.bf16.mxu0 %v305_v0  ;;  %203 = vmatprep.mubr.msk.f32.mxu0 %vm306_vm0, %v307_v1  ;;  %v47_v3 = vld [vmem:[#allocation6 + $0x8] sm:$0xff]  ;;  %v48_v4 = vld [vmem:[#allocation6 + $0x10] sm:$0xff]  ;;  %v49_v6 = vld [vmem:[#allocation6 + $0x18] sm:$0xff]  ;;  %vm50_vm1 = vcmask 261120   ;;  %v308_v15 = vmov 32   ;;  %v142_v24 = vstv %s387_s3  ;;  %s309_s3 = smov [#allocation8]  }
  0x28   :  { %v207_v5 = vpack.c.bf16 %v47_v3, %v46_v2  ;;  %v210_v7 = vpack.c.bf16 %v49_v6, %v48_v4  ;;  %v45_v8 = vld [vmem:[#allocation3] sm:$0xff]  ;;  %v127_v10 = vand.u32 127, %v126_v9  ;;  %222 = vset.pattern.permute.xlu1 %v308_v15  ;;  %221 = vset.pattern.permute.xlu0 %v308_v15  ;;  %s178_s17 = sshll.u32 %s309_s3, 4  ;;  %s179_s17 = int_to_ptr.vmem [resolvable:$true] %s178_s17 }
  0x29   :  { %v189_v36 = vld [vmem:[%s386_s2] ss:$0 sm:$0xff]  ;;  %s273_s18 = scalar_lea.vmem %s179_s17, 128  ;;  %p278_p3 = scmp.lt.s32.totalorder %s179_s17, %s179_s17 }
  0x2a   :  { %208 = vmatpush3.bf16.msra.mxu0 %v207_v5  ;;  %vm128_vm2 = vcmp.eq.s32.totalorder %v127_v10, 32  ;;  %p274_p2 = scmp.ne.s32.totalorder %s179_s17, %s273_s18  ;;  %p279_p4 = scmp.lt.s32.totalorder %s273_s18, %s273_s18 }
  0x2b   :  { %209 = vmatprep.subr.bf16.mxu0 %v305_v0 }
  0x2c   :  { %p280_p5 = por %p279_p4, %p278_p3 }
  0x2e   :  { %211 = vmatpush3.bf16.msra.mxu0 %v210_v7  ;;  %p281_p6 = pnand %p280_p5, %p274_p2 }
  0x31   :  { %204 = vmatmul.mubr.msk.f32.vlgmr.msra.gmra.mrb[0].mxu0 %vm50_vm1, %v45_v8 }
 0x104   :  { %v120_v11 = vpop.f32.mrb[0].mxu0 }
 0x105   :  { %v205_v12 = vpop.f32.mrb[1].mxu0  ;;  %v129_v13 = vsel %vm128_vm2, 0.0, %v120_v11 }
 0x106   :  { %v130_v14 = vmul.f32 %v129_v13, %v129_v13 }
 0x108   :  { %131 = vadd.xlane.f32.xlu0 %v130_v14 }
 0x195   :  { %v132_v16 = vpop.xlane.xlu0 %131 }
 0x196   :  { %v133_v17 = vmax.f32 %v132_v16, 1e-30 }
 0x198   :  { %223 = vrsqrt.f32 %v133_v17 }
 0x1a2   :  { %v224_v18 = vpop.eup %223 }
 0x1a3   :  { %v135_v19 = vmul.f32 %v224_v18, %v133_v17 }
 0x1a5   :  { %225 = vtanh.f32 %v135_v19 }
 0x1af   :  { %v226_v20 = vpop.eup %225 }
 0x1b0   :  { %v137_v21 = vmul.f32 %v226_v20, %v224_v18  ;;  %v138_v22 = vmul.f32 %v226_v20, %v226_v20 }
 0x1b2   :  { %v139_v23 = vmul.f32 %v137_v21, %v120_v11  ;;  %v143_v27 = vmul.f32 %v142_v24, %v138_v22  ;;  %v150_v31 = vsub.f32 1.0, %v138_v22 }
 0x1b4   :  { %v140_v25 = vmul.f32 2.0, %v139_v23 }
 0x1b6   :  { %v141_v26 = vadd.f32 1.0, %v140_v25 }
 0x1b8   :  { %v144_v28 = vadd.f32 %v143_v27, %v141_v26  ;;  %v147_v30 = vadd.f32 %v142_v24, %v141_v26 }
 0x1ba   :  { %v145_v29 = vmax.f32 %v144_v28, 1e-15  ;;  %v148_v32 = vmul.f32 %v147_v30, %v137_v21 }
 0x1bc   :  { %227 = vrcp.f32 %v145_v29 }
 0x1c6   :  { %v228_v33 = vpop.eup %227 }
 0x1c7   :  { %v151_v34 = vmul.f32 %v228_v33, %v150_v31  ;;  %v149_v35 = vmul.f32 %v228_v33, %v148_v32 }
 0x1c9   :  { %160 = vperm.xlu1 %222, %v151_v34   ;;  %154 = vperm.xlu0 %221, %v149_v35  }
 0x248   :  { %v161_v37 = vpop.permute.xlu1 %160  ;;  %v155_v38 = vpop.permute.xlu0 %154 }
 0x249   :  { %v169_v39 = vmul.f32 %v189_v36, %v161_v37  ;;  %v157_v40 = vmul.f32 %v155_v38, %v120_v11 }
 0x24b   :  { %v170_v41 = vadd.f32 %v169_v39, %v157_v40 }
 0x24d   :  { %171 = vst [vmem:[#allocation8] sm:$0xff] %v170_v41 }
 0x24e   :  { %284 = shalt.err (!%p281_p6)
}
 0x24f   :  { %s285_s2 = scalar_lea.hbm %s388_s4, 128 }
 0x250   :  { %p286_p7 = scmp.ne.s32.totalorder %s388_s4, %s285_s2  ;;  %p289_p8 = scmp.lt.u32.totalorder %s285_s2, %s388_s4 }
 0x252   :  { %p291_p9 = pnand %p289_p8, %p286_p7 }
 0x254   :  { %294 = shalt.err (!%p291_p9)
}
 0x255   :  { %181 = dma.vmem_to_hbm [thread:$0]  %s179_s17, 128, %s388_s4, [#allocation5]  }
 0x256   :  { %299 = dma.done.wait [#allocation5], 128  }
 0x257   :  { %300 = vsyncadd [#allocation5], 4294967168 }
 0x258   :  { %185 = vsyncpa [#allocation4], 1 }
 0x259   :  { %186 = vsyncpa [#allocation7], 1 }
 0x25a   :  { %187 = vsyncpa [#allocation5], 1 }

// kernel: tpu_custom_call.1
= control target key start
LH: loop header
LB: loop body
LE: loop exit
PB: predicated region body
PF: predicated region fallthrough
CT: control target
= control target key end

     0   :  { %10 = vsyncpa [#allocation4], 0  ;;  %s384_s0 = inlined_call_operand.hbm [shape: f32[8,32], index: 0, kind: input, shape index: {}]   ;;  %s385_s1 = inlined_call_operand.hbm [shape: f32[32,128], index: 1, kind: input, shape index: {}]   ;;  %s386_s2 = inlined_call_operand.vmem [shape: f32[1,128], index: 2, kind: input, shape index: {}]   ;;  %s387_s3 = inlined_call_operand.<no memory space> [shape: f32[1,1], index: 3, kind: input, shape index: {}]   ;;  %s388_s4 = inlined_call_operand.hbm [shape: f32[8,128], index: 4, kind: output, shape index: {}]  }
   0x1   :  { %11 = vsyncpa [#allocation7], 0 }
   0x2   :  { %12 = vsyncpa [#allocation5], 0  ;;  %s301_s15 = smov [#allocation3]   ;;  %s302_s17 = smov [#allocation6]  }
   0x3   :  { %s19_s16 = sshll.u32 %s301_s15, 4  ;;  %s28_s18 = sshll.u32 %s302_s17, 4  ;;  %s20_s16 = int_to_ptr.vmem [resolvable:$true] %s19_s16  ;;  %s335_s18 = int_to_ptr.vmem [resolvable:$true] %s28_s18 }
   0x4   :  { %s229_s21 = scalar_lea.hbm %s384_s0, 128 }
   0x5   :  { %p230_p0 = scmp.ne.s32.totalorder %s384_s0, %s229_s21  ;;  %p233_p1 = scmp.lt.u32.totalorder %s229_s21, %s384_s0 }
   0x7   :  { %p235_p2 = pnand %p233_p1, %p230_p0 }
   0x9   :  { %238 = shalt.err (!%p235_p2)
}
   0xa   :  { %s239_s26 = scalar_lea.vmem %s20_s16, 128  ;;  %p244_p4 = scmp.lt.s32.totalorder %s20_s16, %s20_s16 }
   0xb   :  { %p240_p3 = scmp.ne.s32.totalorder %s20_s16, %s239_s26  ;;  %p245_p5 = scmp.lt.s32.totalorder %s239_s26, %s239_s26 }
   0xd   :  { %p246_p6 = por %p245_p5, %p244_p4 }
   0xf   :  { %p247_p7 = pnand %p246_p6, %p240_p3 }
  0x11   :  { %250 = shalt.err (!%p247_p7)
}
  0x12   :  { %22 = dma.hbm_to_vmem [thread:$0]  %s384_s0, 128, %s20_s16, [#allocation4]  }
  0x13   :  { %s251_s5 = scalar_lea.hbm %s385_s1, 512 }
  0x14   :  { %p252_p8 = scmp.ne.s32.totalorder %s385_s1, %s251_s5  ;;  %p255_p9 = scmp.lt.u32.totalorder %s251_s5, %s385_s1 }
  0x16   :  { %p257_p10 = pnand %p255_p9, %p252_p8 }
  0x18   :  { %260 = shalt.err (!%p257_p10)
}
  0x19   :  { %s261_s10 = scalar_lea.vmem %s335_s18, 512  ;;  %p266_p12 = scmp.lt.s32.totalorder %s335_s18, %s335_s18 }
  0x1a   :  { %p262_p11 = scmp.ne.s32.totalorder %s335_s18, %s261_s10  ;;  %p267_p13 = scmp.lt.s32.totalorder %s261_s10, %s261_s10 }
  0x1c   :  { %p268_p0 = por %p267_p13, %p266_p12 }
  0x1e   :  { %p269_p1 = pnand %p268_p0, %p262_p11 }
  0x20   :  { %272 = shalt.err (!%p269_p1)
}
  0x21   :  { %s303_s0 = smov 128   ;;  %s304_s11 = smov 8  }
  0x22   :  { %34 = dma.hbm_to_vmem [thread:$0]  %s385_s1, 512, %s335_s18, [#allocation7], %s303_s0, %s303_s0, %s304_s11  }
  0x23   :  { %295 = dma.done.wait [#allocation4], 128  }
  0x24   :  { %296 = vsyncadd [#allocation4], 4294967168 }
  0x25   :  { %297 = dma.done.wait [#allocation7], 512  }
  0x26   :  { %298 = vsyncadd [#allocation7], 4294966784  ;;  %v305_v0 = vmov 0.0|0.0   ;;  %vm306_vm0 = vmmov 0   ;;  %v307_v1 = vmov 0.0   ;;  %v46_v2 = vld [vmem:[#allocation6] sm:$0xff]  ;;  %v126_v9 = vlaneseq }
  0x27   :  { %206 = vmatprep.subr.bf16.mxu0 %v305_v0  ;;  %203 = vmatprep.mubr.msk.f32.mxu0 %vm306_vm0, %v307_v1  ;;  %v47_v3 = vld [vmem:[#allocation6 + $0x8] sm:$0xff]  ;;  %v48_v4 = vld [vmem:[#allocation6 + $0x10] sm:$0xff]  ;;  %v49_v6 = vld [vmem:[#allocation6 + $0x18] sm:$0xff]  ;;  %vm50_vm1 = vcmask 261120   ;;  %v308_v15 = vmov 32   ;;  %v142_v24 = vstv %s387_s3  ;;  %s309_s3 = smov [#allocation8]  }
  0x28   :  { %v207_v5 = vpack.c.bf16 %v47_v3, %v46_v2  ;;  %v210_v7 = vpack.c.bf16 %v49_v6, %v48_v4  ;;  %v45_v8 = vld [vmem:[#allocation3] sm:$0xff]  ;;  %v127_v10 = vand.u32 127, %v126_v9  ;;  %222 = vset.pattern.permute.xlu1 %v308_v15  ;;  %221 = vset.pattern.permute.xlu0 %v308_v15  ;;  %s178_s17 = sshll.u32 %s309_s3, 4  ;;  %s179_s17 = int_to_ptr.vmem [resolvable:$true] %s178_s17 }
  0x29   :  { %v189_v36 = vld [vmem:[%s386_s2] ss:$0 sm:$0xff]  ;;  %s273_s18 = scalar_lea.vmem %s179_s17, 128  ;;  %p278_p3 = scmp.lt.s32.totalorder %s179_s17, %s179_s17 }
  0x2a   :  { %208 = vmatpush3.bf16.msra.mxu0 %v207_v5  ;;  %vm128_vm2 = vcmp.eq.s32.totalorder %v127_v10, 32  ;;  %p274_p2 = scmp.ne.s32.totalorder %s179_s17, %s273_s18  ;;  %p279_p4 = scmp.lt.s32.totalorder %s273_s18, %s273_s18 }
  0x2b   :  { %209 = vmatprep.subr.bf16.mxu0 %v305_v0 }
  0x2c   :  { %p280_p5 = por %p279_p4, %p278_p3 }
  0x2e   :  { %211 = vmatpush3.bf16.msra.mxu0 %v210_v7  ;;  %p281_p6 = pnand %p280_p5, %p274_p2 }
  0x31   :  { %204 = vmatmul.mubr.msk.f32.vlgmr.msra.gmra.mrb[0].mxu0 %vm50_vm1, %v45_v8 }
 0x104   :  { %v120_v11 = vpop.f32.mrb[0].mxu0 }
 0x105   :  { %v205_v12 = vpop.f32.mrb[1].mxu0  ;;  %v129_v13 = vsel %vm128_vm2, 0.0, %v120_v11 }
 0x106   :  { %v130_v14 = vmul.f32 %v129_v13, %v129_v13 }
 0x108   :  { %131 = vadd.xlane.f32.xlu0 %v130_v14 }
 0x195   :  { %v132_v16 = vpop.xlane.xlu0 %131 }
 0x196   :  { %v133_v17 = vmax.f32 %v132_v16, 1e-30 }
 0x198   :  { %223 = vrsqrt.f32 %v133_v17 }
 0x1a2   :  { %v224_v18 = vpop.eup %223 }
 0x1a3   :  { %v135_v19 = vmul.f32 %v224_v18, %v133_v17 }
 0x1a5   :  { %225 = vtanh.f32 %v135_v19 }
 0x1af   :  { %v226_v20 = vpop.eup %225 }
 0x1b0   :  { %v137_v21 = vmul.f32 %v226_v20, %v224_v18  ;;  %v138_v22 = vmul.f32 %v226_v20, %v226_v20 }
 0x1b2   :  { %v139_v23 = vmul.f32 %v137_v21, %v120_v11  ;;  %v143_v27 = vmul.f32 %v142_v24, %v138_v22  ;;  %v150_v31 = vsub.f32 1.0, %v138_v22 }
 0x1b4   :  { %v140_v25 = vmul.f32 2.0, %v139_v23 }
 0x1b6   :  { %v141_v26 = vadd.f32 1.0, %v140_v25 }
 0x1b8   :  { %v144_v28 = vadd.f32 %v143_v27, %v141_v26  ;;  %v147_v30 = vadd.f32 %v142_v24, %v141_v26 }
 0x1ba   :  { %v145_v29 = vmax.f32 %v144_v28, 1e-15  ;;  %v148_v32 = vmul.f32 %v147_v30, %v137_v21 }
 0x1bc   :  { %227 = vrcp.f32 %v145_v29 }
 0x1c6   :  { %v228_v33 = vpop.eup %227 }
 0x1c7   :  { %v151_v34 = vmul.f32 %v228_v33, %v150_v31  ;;  %v149_v35 = vmul.f32 %v228_v33, %v148_v32 }
 0x1c9   :  { %160 = vperm.xlu1 %222, %v151_v34   ;;  %154 = vperm.xlu0 %221, %v149_v35  }
 0x248   :  { %v161_v37 = vpop.permute.xlu1 %160  ;;  %v155_v38 = vpop.permute.xlu0 %154 }
 0x249   :  { %v169_v39 = vmul.f32 %v189_v36, %v161_v37  ;;  %v157_v40 = vmul.f32 %v155_v38, %v120_v11 }
 0x24b   :  { %v170_v41 = vadd.f32 %v169_v39, %v157_v40 }
 0x24d   :  { %171 = vst [vmem:[#allocation8] sm:$0xff] %v170_v41 }
 0x24e   :  { %284 = shalt.err (!%p281_p6)
}
 0x24f   :  { %s285_s2 = scalar_lea.hbm %s388_s4, 128 }
 0x250   :  { %p286_p7 = scmp.ne.s32.totalorder %s388_s4, %s285_s2  ;;  %p289_p8 = scmp.lt.u32.totalorder %s285_s2, %s388_s4 }
 0x252   :  { %p291_p9 = pnand %p289_p8, %p286_p7 }
 0x254   :  { %294 = shalt.err (!%p291_p9)
}
 0x255   :  { %181 = dma.vmem_to_hbm [thread:$0]  %s179_s17, 128, %s388_s4, [#allocation5]  }
 0x256   :  { %299 = dma.done.wait [#allocation5], 128  }
 0x257   :  { %300 = vsyncadd [#allocation5], 4294967168 }
 0x258   :  { %185 = vsyncpa [#allocation4], 1 }
 0x259   :  { %186 = vsyncpa [#allocation7], 1 }
 0x25a   :  { %187 = vsyncpa [#allocation5], 1 }

</bundles_post_ra>
